<compile_context>
chip_gen: v7x
topology: tpu7x:2x2x1
jax: 0.10.0
libtpu: 0.0.40
codegen_flags: <defaults>
</compile_context>

<pallas_src>
import jax
import jax.numpy as jnp
from jax.experimental import pallas as pl
from jax.experimental.pallas import tpu as pltpu


def _round_up(x, m):
    return ((x + m - 1) // m) * m


def ets_kernel(params_ref, x_ref, o_ref):
    # params_ref (SMEM): [1/t, w0, w1, w2 / n_class]
    rcp_t = params_ref[0]
    w0 = params_ref[1]
    w1 = params_ref[2]
    u = params_ref[3]

    x = x_ref[...].astype(jnp.float32)          # (C, TL): classes on sublanes, batch on lanes

    # t > 0  =>  max(x / t) == max(x) / t : one shared cross-sublane max.
    m = jnp.max(x, axis=0, keepdims=True)       # (1, TL)
    d = x - m
    e2 = jnp.exp(d)                             # softmax(x) numerator
    e1 = jnp.exp(d * rcp_t)                     # softmax(x / t) numerator

    s1 = jnp.sum(e1, axis=0, keepdims=True)     # (1, TL)
    s2 = jnp.sum(e2, axis=0, keepdims=True)

    # EUP approx reciprocal + one Newton refinement (error ~2^-24, safe for 1e-5 rtol).
    r1 = pl.reciprocal(s1, approx=True)
    r1 = r1 * (2.0 - s1 * r1)
    r2 = pl.reciprocal(s2, approx=True)
    r2 = r2 * (2.0 - s2 * r2)

    # Fold mixture weights into the (1, TL) reciprocals before broadcasting:
    # removes two full-(C, TL) VPU multiplies per tile (no f32 FMA on v5e/v6e).
    rw1 = w0 * r1
    rw2 = w1 * r2
    o_ref[...] = (e1 * rw1 + e2 * rw2 + u).astype(o_ref.dtype)


def ets_calibrate(x, t, w, *, tile_l=32768, lane_dense_io=False):
    """ETS calibrator forward.

    x: (N, C) logits (or (C, N) when lane_dense_io=True to skip the transposes);
    t: scalar temperature (> 0); w: (3,) mixture weights.
    Returns calibrated probabilities with the same layout as the input.
    """
    if lane_dense_io:
        C, N = x.shape
        xt = x
    else:
        N, C = x.shape
        xt = x.T                                 # fuses with the pad below into one XLA copy

    # ---- Tile sizing along the batch/lane axis --------------------------------
    #  * pad only to a multiple of 128 lanes (per tile), never to a huge tile
    #  * small-N fast path: one tile covering the whole 128-padded batch
    #  * large N: cap tile at `tile_l` (clamped to 64K lanes for VMEM safety)
    #    and use >= 2 tiles so the batch axis shards across v7x's two TCs.
    n128 = _round_up(N, 128)
    tl_cap = max(128, min(_round_up(tile_l, 128), 65536))
    num_tiles = max(1, -(-n128 // tl_cap))
    if num_tiles == 1 and n128 >= 4096:
        num_tiles = 2                            # v7x: keep both TensorCores busy
    tl = _round_up(-(-n128 // num_tiles), 128)
    n_padded = num_tiles * tl

    if n_padded != N:
        xt = jnp.pad(xt, ((0, 0), (0, n_padded - N)))

    t = jnp.asarray(t, jnp.float32)
    w = jnp.asarray(w, jnp.float32)
    # Host-side precompute: [1/t, w0, w1, w2 / n_class] -> SMEM scalars.
    params = jnp.stack([1.0 / t, w[0], w[1], w[2] / jnp.float32(C)])

    out_t = pl.pallas_call(
        ets_kernel,
        out_shape=jax.ShapeDtypeStruct((C, n_padded), x.dtype),
        grid=(num_tiles,),
        in_specs=[
            pl.BlockSpec(memory_space=pltpu.MemorySpace.SMEM),   # params (whole array)
            pl.BlockSpec((C, tl), lambda i: (0, i)),             # logits tile (lane-dense)
        ],
        out_specs=pl.BlockSpec((C, tl), lambda i: (0, i)),
        compiler_params=pltpu.CompilerParams(
            dimension_semantics=("parallel",),
        ),
    )(params, xt)

    if lane_dense_io:
        return out_t[:, :N]
    # Drop padding and undo the transpose to restore the (N, C) module contract.
    return out_t[:, :N].T


def ets_reference(x, t, w):
    p1 = jax.nn.softmax(x / t, axis=-1)
    p2 = jax.nn.softmax(x, axis=-1)
    return w[0] * p1 + w[1] * p2 + w[2] / x.shape[-1]


# TODO(synk): the calibrator's train()/evaluate() paths (optimizers, ECE metric)
# are host-side training utilities, not part of forward(), and are not ported.

if __name__ == "__main__":
    key = jax.random.PRNGKey(0)

    # cifar10-style: n_class = 10, small batch of logits.
    N, C = 32, 10
    x = jax.random.normal(key, (N, C), dtype=jnp.float32) * 3.0

    # Deterministic parameter init (synthetic; no checkpoint load).
    t = jnp.float32(1.5)                             # learned temperature (> 0)
    w = jnp.asarray([0.6, 0.3, 0.1], jnp.float32)    # learned ensemble weights

    # Small-N fast path (single tile).
    q = ets_calibrate(x, t, w)
    q = jax.block_until_ready(q)

    ref = ets_reference(x, t, w)
    assert q.shape == (N, C)
    assert jnp.allclose(q, ref, atol=1e-5, rtol=1e-5)
    assert jnp.allclose(jnp.sum(q, axis=-1), 1.0, atol=1e-4)

    # Multi-tile path with ragged batch (exercises grid > 1 and lane padding).
    N2 = 300
    x2 = jax.random.normal(jax.random.PRNGKey(1), (N2, C), dtype=jnp.float32) * 3.0
    q2 = jax.block_until_ready(ets_calibrate(x2, t, w, tile_l=128))
    assert q2.shape == (N2, C)
    assert jnp.allclose(q2, ets_reference(x2, t, w), atol=1e-5, rtol=1e-5)

    print("KERNEL_OK")
</pallas_src>

<mosaic_0001>
module attributes {stable_mosaic.version = 11 : i64} {
  func.func @ets_kernel(%arg0: i32, %arg1: memref<4xf32, #tpu.memory_space<smem>>, %arg2: memref<10x128xf32, #tpu.memory_space<vmem>>, %arg3: memref<10x128xf32, #tpu.memory_space<vmem>>) attributes {dimension_semantics = [#tpu.dimension_semantics<parallel>], iteration_bounds = array<i64: 1>, scalar_prefetch = 0 : i64, scratch_operands = 0 : i64, tpu.core_type = #tpu.core_type<tc>, window_params = [{transform_indices = @transform_0, window_bounds = array<i64: 4>}, {transform_indices = @transform_1, window_bounds = array<i64: 10, 128>}, {transform_indices = @transform_2, window_bounds = array<i64: 10, 128>}]} {
    %c0 = arith.constant 0 : index
    %0 = memref.load %arg1[%c0] : memref<4xf32, #tpu.memory_space<smem>>
    %c1 = arith.constant 1 : index
    %1 = memref.load %arg1[%c1] : memref<4xf32, #tpu.memory_space<smem>>
    %c2 = arith.constant 2 : index
    %2 = memref.load %arg1[%c2] : memref<4xf32, #tpu.memory_space<smem>>
    %c3 = arith.constant 3 : index
    %3 = memref.load %arg1[%c3] : memref<4xf32, #tpu.memory_space<smem>>
    %c0_0 = arith.constant 0 : index
    %c0_1 = arith.constant 0 : index
    %4 = vector.load %arg2[%c0_0, %c0_1] : memref<10x128xf32, #tpu.memory_space<vmem>>, vector<10x128xf32>
    %cst = arith.constant dense<0xFF800000> : vector<128xf32>
    %5 = vector.multi_reduction <maximumf>, %4, %cst [0] : vector<10x128xf32> to vector<128xf32>
    %6 = vector.shape_cast %5 : vector<128xf32> to vector<1x128xf32>
    %7 = vector.broadcast %6 : vector<1x128xf32> to vector<10x128xf32>
    %8 = arith.subf %4, %7 : vector<10x128xf32>
    %9 = math.exp %8 : vector<10x128xf32>
    %10 = vector.broadcast %0 : f32 to vector<10x128xf32>
    %11 = arith.mulf %8, %10 : vector<10x128xf32>
    %12 = math.exp %11 : vector<10x128xf32>
    %cst_2 = arith.constant dense<0.000000e+00> : vector<128xf32>
    %13 = vector.multi_reduction <add>, %12, %cst_2 [0] : vector<10x128xf32> to vector<128xf32>
    %14 = vector.shape_cast %13 : vector<128xf32> to vector<1x128xf32>
    %cst_3 = arith.constant dense<0.000000e+00> : vector<128xf32>
    %15 = vector.multi_reduction <add>, %9, %cst_3 [0] : vector<10x128xf32> to vector<128xf32>
    %16 = vector.shape_cast %15 : vector<128xf32> to vector<1x128xf32>
    %17 = tpu.reciprocal %14 {approx = true} : vector<1x128xf32> -> vector<1x128xf32>
    %18 = arith.mulf %14, %17 : vector<1x128xf32>
    %cst_4 = arith.constant 2.000000e+00 : f32
    %19 = vector.broadcast %cst_4 : f32 to vector<1x128xf32>
    %20 = arith.subf %19, %18 : vector<1x128xf32>
    %21 = arith.mulf %17, %20 : vector<1x128xf32>
    %22 = tpu.reciprocal %16 {approx = true} : vector<1x128xf32> -> vector<1x128xf32>
    %23 = arith.mulf %16, %22 : vector<1x128xf32>
    %cst_5 = arith.constant 2.000000e+00 : f32
    %24 = vector.broadcast %cst_5 : f32 to vector<1x128xf32>
    %25 = arith.subf %24, %23 : vector<1x128xf32>
    %26 = arith.mulf %22, %25 : vector<1x128xf32>
    %27 = vector.broadcast %1 : f32 to vector<1x128xf32>
    %28 = arith.mulf %27, %21 : vector<1x128xf32>
    %29 = vector.broadcast %2 : f32 to vector<1x128xf32>
    %30 = arith.mulf %29, %26 : vector<1x128xf32>
    %31 = vector.broadcast %28 : vector<1x128xf32> to vector<10x128xf32>
    %32 = arith.mulf %12, %31 : vector<10x128xf32>
    %33 = vector.broadcast %30 : vector<1x128xf32> to vector<10x128xf32>
    %34 = arith.mulf %9, %33 : vector<10x128xf32>
    %35 = arith.addf %32, %34 : vector<10x128xf32>
    %36 = vector.broadcast %3 : f32 to vector<10x128xf32>
    %37 = arith.addf %35, %36 : vector<10x128xf32>
    %c0_6 = arith.constant 0 : index
    %c0_7 = arith.constant 0 : index
    %38 = vector.load %arg3[%c0_6, %c0_7] : memref<10x128xf32, #tpu.memory_space<vmem>>, vector<10x128xf32>
    tpu.vector_store %arg3[%c0_6, %c0_7], %37 {strides = array<i32>} : memref<10x128xf32, #tpu.memory_space<vmem>>, vector<10x128xf32>,
    return
  }
  func.func @transform_0(%arg0: i32) -> i32 {
    %c0_i32 = arith.constant 0 : i32
    %c0_i32_0 = arith.constant 0 : i32
    return %c0_i32 : i32
  }
  func.func @transform_1(%arg0: i32) -> (i32, i32) {
    %c0_i32 = arith.constant 0 : i32
    %c0_i32_0 = arith.constant 0 : i32
    return %c0_i32, %arg0 : i32, i32
  }
  func.func @transform_2(%arg0: i32) -> (i32, i32) {
    %c0_i32 = arith.constant 0 : i32
    %c0_i32_0 = arith.constant 0 : i32
    return %c0_i32, %arg0 : i32, i32
  }
}

</mosaic_0001>

<bundles_post_ra>
// kernel: tpu_custom_call.1
= control target key start
LH: loop header
LB: loop body
LE: loop exit
PB: predicated region body
PF: predicated region fallthrough
CT: control target
= control target key end

     0   :  { %7 = vsyncpa [#allocation5], 0  ;;  %s267_s0 = inlined_call_operand.hbm [shape: f32[4], index: 0, kind: input, shape index: {}]   ;;  %s268_s1 = inlined_call_operand.hbm [shape: f32[10,128], index: 1, kind: input, shape index: {}]   ;;  %s269_s2 = inlined_call_operand.hbm [shape: f32[10,128], index: 2, kind: output, shape index: {}]  }
   0x1   :  { %8 = vsyncpa [#allocation3], 0 }
   0x2   :  { %9 = vsyncpa [#allocation4], 0  ;;  %s142_s11 = scalar_lea.hbm %s267_s0, 16 }
   0x3   :  { %p143_p0 = scmp.ne.s32.totalorder %s267_s0, %s142_s11  ;;  %p146_p1 = scmp.lt.u32.totalorder %s142_s11, %s267_s0 }
   0x5   :  { %p148_p2 = pnand %p146_p1, %p143_p0 }
   0x7   :  { %151 = shalt.err (!%p148_p2)
}
   0x8   :  { %s202_s16 = smov [#allocation2]   ;;  %s203_s19 = smov [#allocation6]  }
   0x9   :  { %17 = dma.hbm_to_smem %s267_s0, 16, %s202_s16, [#allocation5]  }
   0xa   :  { %s23_s20 = sshll.u32 %s203_s19, 4  ;;  %s152_s23 = scalar_lea.hbm %s268_s1, 256  ;;  %s24_s20 = int_to_ptr.vmem [resolvable:$true] %s23_s20 }
   0xb   :  { %p153_p3 = scmp.ne.s32.totalorder %s268_s1, %s152_s23  ;;  %p156_p4 = scmp.lt.u32.totalorder %s152_s23, %s268_s1 }
   0xd   :  { %p158_p5 = pnand %p156_p4, %p153_p3 }
   0xf   :  { %161 = shalt.err (!%p158_p5)
}
  0x10   :  { %s162_s28 = scalar_lea.vmem %s24_s20, 256  ;;  %p167_p7 = scmp.lt.s32.totalorder %s24_s20, %s24_s20 }
  0x11   :  { %p163_p6 = scmp.ne.s32.totalorder %s24_s20, %s162_s28  ;;  %p168_p8 = scmp.lt.s32.totalorder %s162_s28, %s162_s28 }
  0x13   :  { %p169_p9 = por %p168_p8, %p167_p7 }
  0x15   :  { %p170_p10 = pnand %p169_p9, %p163_p6 }
  0x17   :  { %173 = shalt.err (!%p170_p10)
}
  0x18   :  { %s204_s0 = smov 128   ;;  %s205_s29 = smov 8  }
  0x19   :  { %29 = dma.hbm_to_vmem [thread:$0]  %s268_s1, 256, %s24_s20, [#allocation3], %s204_s0, %s204_s0, %s205_s29  }
  0x1a   :  { %196 = dma.done.wait [#allocation5], 16  }
  0x1b   :  { %197 = vsyncadd [#allocation5], 4294967280 }
  0x1c   :  { %198 = dma.done.wait [#allocation3], 256  }
  0x1d   :  { %199 = vsyncadd [#allocation3], 4294967040 }
  0x1e   :  { %36 = sfence }
  0x1f   :  { %v41_v0 = vld [vmem:[#allocation6] sm:$0xff]  ;;  %vm43_vm0 = vcmask 1041408   ;;  %v42_v1 = vld [vmem:[#allocation6 + $0x8] sm:$0x3]  ;;  %s37_s4 = sld [smem:[#allocation2]]  ;;  %s123_s1 = sld [smem:[#allocation2 + $0x2]] }
  0x20   :  { %v44_v2 = vsel %vm43_vm0, %v42_v1, -inf  ;;  %s122_s5 = sld [smem:[#allocation2 + $0x1]]  ;;  %s124_s6 = sld [smem:[#allocation2 + $0x3]] }
  0x21   :  { %v45_v3 = vmax.f32 %v41_v0, %v44_v2  ;;  %s206_s7 = smov [#allocation7]  }
  0x22   :  { %s109_s8 = sshll.u32 %s206_s7, 4  ;;  %s110_s8 = int_to_ptr.vmem [resolvable:$true] %s109_s8 }
  0x23   :  { %v46_v4 = vrot.slane %v45_v3, 4  ;;  %s174_s9 = scalar_lea.vmem %s110_s8, 256  ;;  %p179_p12 = scmp.lt.s32.totalorder %s110_s8, %s110_s8 }
  0x24   :  { %p175_p11 = scmp.ne.s32.totalorder %s110_s8, %s174_s9  ;;  %p180_p13 = scmp.lt.s32.totalorder %s174_s9, %s174_s9 }
  0x25   :  { %v47_v5 = vmax.f32 %v45_v3, %v46_v4  ;;  %v58_v10 = vstv %s37_s4  ;;  %v91_v44 = vstv %s123_s1 }
  0x26   :  { %v89_v47 = vstv %s122_s5  ;;  %v99_v55 = vstv %s124_s6  ;;  %p181_p0 = por %p180_p13, %p179_p12 }
  0x27   :  { %v48_v6 = vrot.slane %v47_v5, 2 }
  0x28   :  { %p182_p1 = pnand %p181_p0, %p175_p11 }
  0x29   :  { %v49_v7 = vmax.f32 %v47_v5, %v48_v6 }
  0x2b   :  { %v50_v8 = vrot.slane %v49_v7, 1 }
  0x2d   :  { %v51_v9 = vmax.f32 %v49_v7, %v50_v8 }
  0x2f   :  { %v52_v11 = vsub.f32 %v41_v0, %v51_v9  ;;  %v53_v12 = vsub.f32 %v42_v1, %v51_v9 }
  0x31   :  { %v54_v13 = vmul.f32 1.442695, %v52_v11  ;;  %v56_v14 = vmul.f32 1.442695, %v53_v12  ;;  %v59_v15 = vmul.f32 %v58_v10, %v52_v11  ;;  %v60_v16 = vmul.f32 %v58_v10, %v53_v12 }
  0x33   :  { %130 = vpow2.f32 %v54_v13  ;;  %v61_v17 = vmul.f32 1.442695, %v59_v15  ;;  %v63_v18 = vmul.f32 1.442695, %v60_v16 }
  0x34   :  { %132 = vpow2.f32 %v56_v14 }
  0x35   :  { %134 = vpow2.f32 %v61_v17 }
  0x36   :  { %136 = vpow2.f32 %v63_v18 }
  0x3d   :  { %v131_v19 = vpop.eup %130 }
  0x3e   :  { %v133_v20 = vpop.eup %132 }
  0x3f   :  { %v135_v21 = vpop.eup %134  ;;  %v73_v22 = vsel %vm43_vm0, %v133_v20, 0.0 }
  0x40   :  { %v137_v23 = vpop.eup %136  ;;  %v74_v24 = vadd.f32 %v131_v19, %v73_v22 }
  0x41   :  { %v65_v25 = vsel %vm43_vm0, %v137_v23, 0.0 }
  0x42   :  { %v66_v26 = vadd.f32 %v135_v21, %v65_v25  ;;  %v75_v27 = vrot.slane %v74_v24, 4 }
  0x44   :  { %v67_v28 = vrot.slane %v66_v26, 4  ;;  %v76_v29 = vadd.f32 %v75_v27, %v74_v24 }
  0x46   :  { %v68_v30 = vadd.f32 %v67_v28, %v66_v26  ;;  %v77_v31 = vrot.slane %v76_v29, 2 }
  0x48   :  { %v69_v32 = vrot.slane %v68_v30, 2  ;;  %v78_v33 = vadd.f32 %v77_v31, %v76_v29 }
  0x4a   :  { %v70_v34 = vadd.f32 %v69_v32, %v68_v30  ;;  %v79_v35 = vrot.slane %v78_v33, 1 }
  0x4c   :  { %v71_v36 = vrot.slane %v70_v34, 1  ;;  %v80_v37 = vadd.f32 %v79_v35, %v78_v33 }
  0x4e   :  { %v72_v38 = vadd.f32 %v71_v36, %v70_v34  ;;  %138 = vrcp.f32 %v80_v37 }
  0x50   :  { %140 = vrcp.f32 %v72_v38 }
  0x58   :  { %v139_v39 = vpop.eup %138 }
  0x59   :  { %v86_v40 = vmul.f32 %v139_v39, %v80_v37 }
  0x5a   :  { %v141_v41 = vpop.eup %140 }
  0x5b   :  { %v82_v42 = vmul.f32 %v141_v41, %v72_v38  ;;  %v87_v43 = vsub.f32 2.0, %v86_v40 }
  0x5d   :  { %v83_v45 = vsub.f32 2.0, %v82_v42  ;;  %v88_v46 = vmul.f32 %v139_v39, %v87_v43 }
  0x5f   :  { %v84_v48 = vmul.f32 %v141_v41, %v83_v45  ;;  %v92_v49 = vmul.f32 %v91_v44, %v88_v46 }
  0x61   :  { %v90_v50 = vmul.f32 %v89_v47, %v84_v48  ;;  %v95_v51 = vmul.f32 %v131_v19, %v92_v49  ;;  %v96_v52 = vmul.f32 %v133_v20, %v92_v49 }
  0x63   :  { %v93_v53 = vmul.f32 %v135_v21, %v90_v50  ;;  %v94_v54 = vmul.f32 %v137_v23, %v90_v50 }
  0x65   :  { %v97_v56 = vadd.f32 %v95_v51, %v93_v53  ;;  %v98_v57 = vadd.f32 %v96_v52, %v94_v54 }
  0x67   :  { %v100_v58 = vadd.f32 %v99_v55, %v97_v56  ;;  %v101_v59 = vadd.f32 %v99_v55, %v98_v57 }
  0x69   :  { %102 = vst [vmem:[#allocation7] sm:$0xff] %v100_v58  ;;  %103 = vst [vmem:[#allocation7 + $0x8] sm:$0x3] %v101_v59 }
  0x6a   :  { %185 = shalt.err (!%p182_p1)
}
  0x6b   :  { %s186_s12 = scalar_lea.hbm %s269_s2, 256 }
  0x6c   :  { %p187_p2 = scmp.ne.s32.totalorder %s269_s2, %s186_s12  ;;  %p190_p3 = scmp.lt.u32.totalorder %s186_s12, %s269_s2 }
  0x6e   :  { %p192_p4 = pnand %p190_p3, %p187_p2 }
  0x70   :  { %195 = shalt.err (!%p192_p4)
}
  0x71   :  { %115 = dma.vmem_to_hbm [thread:$0]  %s110_s8, 256, %s269_s2, [#allocation4], %s204_s0, %s204_s0, %s205_s29  }
  0x72   :  { %200 = dma.done.wait [#allocation4], 256  }
  0x73   :  { %201 = vsyncadd [#allocation4], 4294967040 }
  0x74   :  { %119 = vsyncpa [#allocation3], 1 }
  0x75   :  { %120 = vsyncpa [#allocation4], 1 }
  0x76   :  { %121 = vsyncpa [#allocation5], 1 }

</bundles_post_ra>
